<compile_context>
chip_gen: v7x
topology: tpu7x:2x2x1
jax: 0.10.0
libtpu: 0.0.40
codegen_flags: <defaults>
</compile_context>

<pallas_src>
import functools

import jax
import jax.numpy as jnp
from jax.experimental import pallas as pl
from jax.experimental.pallas import tpu as pltpu

EPS_PPO = 1e-05
LANES = 128
SUBLANES = 8

# PPO hyper-parameters (constructor args of the module; fixed here).
CLIP_PARAM = 0.2
VALUE_LOSS_COEF = 0.5
ENTROPY_COEF = 0.01

# Path selection: below this many lane-dense (rows, 128) rows the whole
# minibatch fits comfortably in VMEM (7 arrays x 2 buffers well under the
# raised scoped limit) and one fused launch is fastest; above it, switch to the
# row-tiled two-pass pipeline.
SINGLE_BLOCK_MAX_ROWS = 1024          # 131072 samples
TILE_ROWS = 512                       # (512, 128) tiles ~ 85% of HBM roofline


# ---------------------------------------------------------------------------
# Small in-kernel helpers
# ---------------------------------------------------------------------------
def _pack_lanes(scalars, rows, lanes):
    """Pack traced scalars into lanes 0..k-1 of a (rows, lanes) f32 tile."""
    lid = jax.lax.broadcasted_iota(jnp.int32, (rows, lanes), 1)
    out = jnp.where(lid == 0, scalars[0], 0.0)
    for k in range(1, len(scalars)):
        out = out + jnp.where(lid == k, scalars[k], 0.0)
    return out


def _valid_mask(rows, lanes, base, n_true):
    """Mask of real (unpadded) elements: flat row-major index < n_true."""
    row_i = jax.lax.broadcasted_iota(jnp.int32, (rows, lanes), 0)
    lane_i = jax.lax.broadcasted_iota(jnp.int32, (rows, lanes), 1)
    return (base + row_i * lanes + lane_i) < n_true


# ---------------------------------------------------------------------------
# Single-block fused kernel (small rollouts): normalized advantages + losses
# ---------------------------------------------------------------------------
def _ppo_fused_kernel(ret_ref, vpred_ref, values_ref, alp_ref, old_alp_ref,
                      ent_ref, adv_ref, scalars_ref, *, n_true, clip_param,
                      value_loss_coef, entropy_coef, use_clipped_value_loss,
                      use_normalized_advantage):
    rows, lanes = ret_ref.shape
    n_pad = rows * lanes
    inv_n = 1.0 / n_true

    ret = ret_ref[...]
    vpred = vpred_ref[...]
    # Inputs are zero-padded, so adv_raw is exactly zero on padded lanes.
    adv_raw = ret - vpred

    if use_normalized_advantage:
        mean = jnp.sum(adv_raw) * inv_n
        if n_true < n_pad:
            # The only select in the kernel: padded lanes of the centered
            # advantage must be zero so every downstream sum stays exact.
            centered = jnp.where(_valid_mask(rows, lanes, 0, n_true),
                                 adv_raw - mean, 0.0)
        else:
            centered = adv_raw - mean
        # Two-pass variance (torch.Tensor.std() is ddof=1).  n_true == 1 gives
        # 1/EPS instead of torch's NaN -- benign behavioural difference.
        denom = n_true - 1 if n_true > 1 else 1
        var = jnp.sum(centered * centered) / denom
        inv_std = 1.0 / (jnp.sqrt(var) + EPS_PPO)
        adv = centered * inv_std
    else:
        adv = adv_raw
    adv_ref[...] = adv

    # Clipped surrogate.  adv == 0 on padded lanes -> surrogate terms vanish
    # there, so the unmasked sums are exact.
    ratio = jnp.exp(alp_ref[...] - old_alp_ref[...])           # EUP
    surr1 = ratio * adv
    surr2 = jnp.clip(ratio, 1.0 - clip_param, 1.0 + clip_param) * adv
    action_loss = -(jnp.sum(jnp.minimum(surr1, surr2)) * inv_n)

    # (Clipped) value loss.  ret = values = vpred = 0 on padded lanes -> 0.
    values = values_ref[...]
    if use_clipped_value_loss:
        vpc = vpred + jnp.clip(values - vpred, -clip_param, clip_param)
        d = values - ret
        dc = vpc - ret
        vl = jnp.maximum(d * d, dc * dc)
    else:
        d = ret - values
        vl = d * d
    value_loss = 0.5 * (jnp.sum(vl) * inv_n)

    # dist_entropy arrives as per-sample entropies (zero-padded).
    dist_entropy = jnp.sum(ent_ref[...]) * inv_n
    total_loss = (value_loss * value_loss_coef + action_loss
                  - dist_entropy * entropy_coef)

    scalars_ref[...] = _pack_lanes(
        [value_loss, action_loss, dist_entropy, total_loss], 1, lanes)


# ---------------------------------------------------------------------------
# Tiled two-pass kernels (large rollouts)
# ---------------------------------------------------------------------------
def _adv_stats_kernel(ret_ref, vpred_ref, part_ref, *, n_true, n_pad):
    """Per-tile Welford stats of (returns - value_preds): [sum, M2, count]."""
    tile_rows, lanes = ret_ref.shape
    tile_elems = tile_rows * lanes
    base = pl.program_id(0) * tile_elems

    adv = ret_ref[...] - vpred_ref[...]            # zero on padded lanes
    s = jnp.sum(adv)
    if n_true < n_pad:
        cnt = jnp.clip(n_true - base, 0, tile_elems).astype(jnp.float32)
        mean_i = s / jnp.maximum(cnt, 1.0)
        centered = jnp.where(_valid_mask(tile_rows, lanes, base, n_true),
                             adv - mean_i, 0.0)
    else:
        cnt = jnp.float32(tile_elems)
        mean_i = s / cnt
        centered = adv - mean_i
    m2 = jnp.sum(centered * centered)
    part_ref[0] = _pack_lanes([s, m2, cnt], SUBLANES, lanes)


def _tiled_loss_kernel(stats_ref, ret_ref, vpred_ref, values_ref, alp_ref,
                       old_alp_ref, ent_ref, adv_ref, part_ref, *, n_true,
                       n_pad, clip_param, use_clipped_value_loss,
                       use_normalized_advantage):
    """Per-tile advantages + partial loss sums [sum(min surr), sum(vl), sum(ent)]."""
    tile_rows, lanes = ret_ref.shape
    tile_elems = tile_rows * lanes
    base = pl.program_id(0) * tile_elems

    ret = ret_ref[...]
    vpred = vpred_ref[...]
    adv_raw = ret - vpred                          # zero on padded lanes

    if use_normalized_advantage:
        mean = stats_ref[0]
        inv_std = stats_ref[1]
        if n_true < n_pad:
            centered = jnp.where(_valid_mask(tile_rows, lanes, base, n_true),
                                 adv_raw - mean, 0.0)
        else:
            centered = adv_raw - mean
        adv = centered * inv_std
    else:
        adv = adv_raw
    adv_ref[...] = adv

    ratio = jnp.exp(alp_ref[...] - old_alp_ref[...])
    surr1 = ratio * adv
    surr2 = jnp.clip(ratio, 1.0 - clip_param, 1.0 + clip_param) * adv
    surr_sum = jnp.sum(jnp.minimum(surr1, surr2))

    values = values_ref[...]
    if use_clipped_value_loss:
        vpc = vpred + jnp.clip(values - vpred, -clip_param, clip_param)
        d = values - ret
        dc = vpc - ret
        vl = jnp.maximum(d * d, dc * dc)
    else:
        d = ret - values
        vl = d * d
    vl_sum = jnp.sum(vl)
    ent_sum = jnp.sum(ent_ref[...])

    part_ref[0] = _pack_lanes([surr_sum, vl_sum, ent_sum], SUBLANES, lanes)


# ---------------------------------------------------------------------------
# Wrappers
# ---------------------------------------------------------------------------
def _lane_dense(x_flat, n_pad):
    """(R,) -> f32 (n_pad//128, 128) lane-dense; zero pad only when needed."""
    r = x_flat.shape[0]
    x = x_flat.astype(jnp.float32)
    if n_pad != r:
        x = jnp.pad(x, (0, n_pad - r))
    return x.reshape(n_pad // LANES, LANES)


def _ppo_single_block(flats, r, *, clip_param, value_loss_coef, entropy_coef,
                      use_clipped_value_loss, use_normalized_advantage):
    rows = max(pl.cdiv(r, LANES), 1)
    n_pad = rows * LANES
    dense = [_lane_dense(x, n_pad) for x in flats]

    big = pl.BlockSpec((rows, LANES), lambda i: (0, 0))
    one_row = pl.BlockSpec((1, LANES), lambda i: (0, 0))
    kernel = functools.partial(
        _ppo_fused_kernel, n_true=r, clip_param=clip_param,
        value_loss_coef=value_loss_coef, entropy_coef=entropy_coef,
        use_clipped_value_loss=use_clipped_value_loss,
        use_normalized_advantage=use_normalized_advantage)

    adv_pad, scalars = pl.pallas_call(
        kernel,
        out_shape=(jax.ShapeDtypeStruct((rows, LANES), jnp.float32),
                   jax.ShapeDtypeStruct((1, LANES), jnp.float32)),
        grid=(1,),
        in_specs=[big] * 6,
        out_specs=(big, one_row),
        compiler_params=pltpu.CompilerParams(
            dimension_semantics=("arbitrary",),
            # single grid step -> raise the scoped-VMEM limit (v5e default is
            # 16 MiB) rather than tile mid-size rollouts.
            vmem_limit_bytes=32 * 1024 * 1024,
            # let XLA fuse the pad/reshape producers into the operand reads so
            # the lane-dense relayout never round-trips through HBM.
            allow_input_fusion=[True] * 6),
    )(*dense)

    adv = adv_pad.reshape(n_pad)[:r]
    return adv, scalars[0, 0], scalars[0, 1], scalars[0, 2], scalars[0, 3]


def _ppo_tiled(flats, r, *, tile_rows, clip_param, value_loss_coef,
               entropy_coef, use_clipped_value_loss, use_normalized_advantage):
    rows = max(pl.cdiv(r, LANES), 1)
    num_tiles = pl.cdiv(rows, tile_rows)
    rows_pad = num_tiles * tile_rows
    n_pad = rows_pad * LANES
    ret_d, vp_d, vals_d, alp_d, oalp_d, ent_d = [
        _lane_dense(x, n_pad) for x in flats]

    tile_spec = pl.BlockSpec((tile_rows, LANES), lambda i: (i, 0))
    part_spec = pl.BlockSpec((1, SUBLANES, LANES), lambda i: (i, 0, 0))
    part_shape = jax.ShapeDtypeStruct((num_tiles, SUBLANES, LANES), jnp.float32)

    if use_normalized_advantage:
        part1 = pl.pallas_call(
            functools.partial(_adv_stats_kernel, n_true=r, n_pad=n_pad),
            out_shape=part_shape,
            grid=(num_tiles,),
            in_specs=[tile_spec, tile_spec],
            out_specs=part_spec,
            compiler_params=pltpu.CompilerParams(
                dimension_semantics=("parallel",),      # v7x: both TCs
                allow_input_fusion=[True] * 2),
        )(ret_d, vp_d)
        # Parallel-variance (Chan et al.) combine of the per-tile Welford
        # stats: numerically equivalent to a two-pass std, no sum-sq
        # cancellation.  Tiny (num_tiles-sized) reduction done in XLA.
        s_i = part1[:, 0, 0]
        m2_i = part1[:, 0, 1]
        c_i = part1[:, 0, 2]
        mean = jnp.sum(s_i) / r
        mean_i = s_i / jnp.maximum(c_i, 1.0)
        m2 = jnp.sum(m2_i) + jnp.sum(c_i * (mean_i - mean) ** 2)
        denom = r - 1 if r > 1 else 1
        var = jnp.maximum(m2 / denom, 0.0)
        inv_std = 1.0 / (jnp.sqrt(var) + EPS_PPO)
        stats = jnp.stack([mean, inv_std]).astype(jnp.float32)
    else:
        stats = jnp.array([0.0, 1.0], jnp.float32)

    loss_kernel = functools.partial(
        _tiled_loss_kernel, n_true=r, n_pad=n_pad, clip_param=clip_param,
        use_clipped_value_loss=use_clipped_value_loss,
        use_normalized_advantage=use_normalized_advantage)
    adv_pad, part2 = pl.pallas_call(
        loss_kernel,
        out_shape=(jax.ShapeDtypeStruct((rows_pad, LANES), jnp.float32),
                   part_shape),
        grid=(num_tiles,),
        in_specs=[pl.BlockSpec(memory_space=pltpu.MemorySpace.SMEM)]
                 + [tile_spec] * 6,
        out_specs=(tile_spec, part_spec),
        compiler_params=pltpu.CompilerParams(
            dimension_semantics=("parallel",),          # v7x: both TCs
            allow_input_fusion=[False] + [True] * 6),
    )(stats, ret_d, vp_d, vals_d, alp_d, oalp_d, ent_d)

    inv_n = 1.0 / r
    action_loss = -jnp.sum(part2[:, 0, 0]) * inv_n
    value_loss = 0.5 * jnp.sum(part2[:, 0, 1]) * inv_n
    ent_mean = jnp.sum(part2[:, 0, 2]) * inv_n
    total_loss = (value_loss * value_loss_coef + action_loss
                  - ent_mean * entropy_coef)
    adv = adv_pad.reshape(n_pad)[:r]
    return adv, value_loss, action_loss, ent_mean, total_loss


def ppo_update(returns_buf, value_preds_buf, values, action_log_probs,
               old_action_log_probs, dist_entropy, *,
               clip_param=CLIP_PARAM, value_loss_coef=VALUE_LOSS_COEF,
               entropy_coef=ENTROPY_COEF, use_clipped_value_loss=True,
               use_normalized_advantage=True, tile_rows=TILE_ROWS,
               force_tiled=False):
    """Fused PPOOracle.get_advantages + per-minibatch loss.

    returns_buf / value_preds_buf: rollout buffers, shape (T+1, N, 1).
    values / action_log_probs / old_action_log_probs / dist_entropy: (T*N, 1)
    outputs of actor_critic.evaluate_actions (external network, not modeled).

    Returns (advantages (T, N, 1), value_loss, action_loss,
             dist_entropy_mean, total_loss).
    """
    tp1, n_env, _ = returns_buf.shape
    t = tp1 - 1
    r = t * n_env

    flats = (returns_buf[:-1].reshape(r), value_preds_buf[:-1].reshape(r),
             values.reshape(r), action_log_probs.reshape(r),
             old_action_log_probs.reshape(r), dist_entropy.reshape(r))

    rows = max(pl.cdiv(r, LANES), 1)
    common = dict(clip_param=clip_param, value_loss_coef=value_loss_coef,
                  entropy_coef=entropy_coef,
                  use_clipped_value_loss=use_clipped_value_loss,
                  use_normalized_advantage=use_normalized_advantage)
    if force_tiled or rows > SINGLE_BLOCK_MAX_ROWS:
        adv, vl, al, em, tot = _ppo_tiled(flats, r, tile_rows=tile_rows,
                                          **common)
    else:
        adv, vl, al, em, tot = _ppo_single_block(flats, r, **common)
    return adv.reshape(t, n_env, 1), vl, al, em, tot


# ---------------------------------------------------------------------------
# Pure-JAX reference (mirrors the PyTorch module, for correctness checking)
# ---------------------------------------------------------------------------
def _ref(returns_buf, value_preds_buf, values, alp, oalp, ent):
    ret = returns_buf[:-1].reshape(-1)
    vp = value_preds_buf[:-1].reshape(-1)
    adv = ret - vp
    adv = (adv - adv.mean()) / (adv.std(ddof=1) + EPS_PPO)
    v = values.reshape(-1)
    a = alp.reshape(-1)
    o = oalp.reshape(-1)
    e = ent.reshape(-1)
    ratio = jnp.exp(a - o)
    surr1 = ratio * adv
    surr2 = jnp.clip(ratio, 1.0 - CLIP_PARAM, 1.0 + CLIP_PARAM) * adv
    action_loss = -jnp.minimum(surr1, surr2).mean()
    vpc = vp + jnp.clip(v - vp, -CLIP_PARAM, CLIP_PARAM)
    value_loss = 0.5 * jnp.maximum((v - ret) ** 2, (vpc - ret) ** 2).mean()
    ent_m = e.mean()
    total = (value_loss * VALUE_LOSS_COEF + action_loss
             - ent_m * ENTROPY_COEF)
    return adv, value_loss, action_loss, ent_m, total


if __name__ == "__main__":
    key = jax.random.PRNGKey(0)

    def make_inputs(k, t, n):
        r = t * n
        ks = jax.random.split(k, 6)
        returns_buf = jax.random.normal(ks[0], (t + 1, n, 1), jnp.float32)
        value_preds_buf = jax.random.normal(ks[1], (t + 1, n, 1), jnp.float32)
        values = jax.random.normal(ks[2], (r, 1), jnp.float32)
        alp = -jnp.abs(jax.random.normal(ks[3], (r, 1), jnp.float32))
        oalp = -jnp.abs(jax.random.normal(ks[4], (r, 1), jnp.float32))
        ent = jnp.abs(jax.random.normal(ks[5], (r, 1), jnp.float32))
        return returns_buf, value_preds_buf, values, alp, oalp, ent

    def check(fn, args):
        adv, v_loss, a_loss, ent_m, total = fn(*args)
        jax.block_until_ready(total)
        adv_r, v_r, a_r, e_r, t_r = _ref(*args)
        r = adv_r.shape[0]
        assert jnp.allclose(adv.reshape(r), adv_r, atol=1e-4, rtol=1e-4)
        assert jnp.allclose(v_loss, v_r, atol=1e-4, rtol=1e-4)
        assert jnp.allclose(a_loss, a_r, atol=1e-4, rtol=1e-4)
        assert jnp.allclose(ent_m, e_r, atol=1e-4, rtol=1e-4)
        assert jnp.allclose(total, t_r, atol=1e-4, rtol=1e-4)

    run_single = jax.jit(ppo_update)
    run_tiled = jax.jit(functools.partial(ppo_update, force_tiled=True,
                                          tile_rows=8))

    k1, k2, k3 = jax.random.split(key, 3)
    # Small rollout with a padded lane tail (R=32): single-block fused path.
    check(run_single, make_inputs(k1, 8, 4))
    # Lane-aligned rollout (R=128): single-block no-pad fast path (no mask).
    check(run_single, make_inputs(k2, 16, 8))
    # Forced row-tiled two-pass path (R=1100 -> 2 tiles, partial last tile).
    check(run_tiled, make_inputs(k3, 110, 10))

    print("KERNEL_OK")
</pallas_src>

<mosaic_0001>
module attributes {stable_mosaic.version = 11 : i64} {
  func.func @_ppo_fused_kernel(%arg0: i32, %arg1: memref<1x128xf32, #tpu.memory_space<vmem>>, %arg2: memref<1x128xf32, #tpu.memory_space<vmem>>, %arg3: memref<1x128xf32, #tpu.memory_space<vmem>>, %arg4: memref<1x128xf32, #tpu.memory_space<vmem>>, %arg5: memref<1x128xf32, #tpu.memory_space<vmem>>, %arg6: memref<1x128xf32, #tpu.memory_space<vmem>>, %arg7: memref<1x128xf32, #tpu.memory_space<vmem>>, %arg8: memref<1x128xf32, #tpu.memory_space<vmem>>) attributes {dimension_semantics = [#tpu.dimension_semantics<arbitrary>], iteration_bounds = array<i64: 1>, scalar_prefetch = 0 : i64, scratch_operands = 0 : i64, tpu.core_type = #tpu.core_type<tc>, window_params = [{pipeline_mode = #tpu.pipeline_mode<synchronous>, transform_indices = @transform_0, window_bounds = array<i64: 1, 128>}, {pipeline_mode = #tpu.pipeline_mode<synchronous>, transform_indices = @transform_1, window_bounds = array<i64: 1, 128>}, {pipeline_mode = #tpu.pipeline_mode<synchronous>, transform_indices = @transform_2, window_bounds = array<i64: 1, 128>}, {pipeline_mode = #tpu.pipeline_mode<synchronous>, transform_indices = @transform_3, window_bounds = array<i64: 1, 128>}, {pipeline_mode = #tpu.pipeline_mode<synchronous>, transform_indices = @transform_4, window_bounds = array<i64: 1, 128>}, {pipeline_mode = #tpu.pipeline_mode<synchronous>, transform_indices = @transform_5, window_bounds = array<i64: 1, 128>}, {pipeline_mode = #tpu.pipeline_mode<synchronous>, transform_indices = @transform_6, window_bounds = array<i64: 1, 128>}, {pipeline_mode = #tpu.pipeline_mode<synchronous>, transform_indices = @transform_7, window_bounds = array<i64: 1, 128>}]} {
    %c0 = arith.constant 0 : index
    %c0_0 = arith.constant 0 : index
    %0 = vector.load %arg1[%c0, %c0_0] : memref<1x128xf32, #tpu.memory_space<vmem>>, vector<1x128xf32>
    %c0_1 = arith.constant 0 : index
    %c0_2 = arith.constant 0 : index
    %1 = vector.load %arg2[%c0_1, %c0_2] : memref<1x128xf32, #tpu.memory_space<vmem>>, vector<1x128xf32>
    %2 = arith.subf %0, %1 : vector<1x128xf32>
    %3 = vector.shape_cast %2 : vector<1x128xf32> to vector<1x1x128xf32>
    %cst = arith.constant dense<0.000000e+00> : vector<1xf32>
    %4 = vector.multi_reduction <add>, %3, %cst [1, 2] : vector<1x1x128xf32> to vector<1xf32>
    %5 = vector.shape_cast %4 : vector<1xf32> to vector<1x1x1xf32>
    %6 = vector.extract %5[0, 0, 0] : f32 from vector<1x1x1xf32>
    %cst_3 = arith.constant 3.125000e-02 : f32
    %7 = arith.mulf %6, %cst_3 : f32
    %8 = tpu.iota {dimensions = array<i32: 0>} : vector<1x128xi32>
    %9 = tpu.iota {dimensions = array<i32: 1>} : vector<1x128xi32>
    %c128_i32 = arith.constant 128 : i32
    %10 = vector.broadcast %c128_i32 : i32 to vector<1x128xi32>
    %11 = arith.muli %8, %10 : vector<1x128xi32>
    %c0_i32 = arith.constant 0 : i32
    %12 = vector.broadcast %c0_i32 : i32 to vector<1x128xi32>
    %13 = arith.addi %12, %11 : vector<1x128xi32>
    %14 = arith.addi %13, %9 : vector<1x128xi32>
    %c32_i32 = arith.constant 32 : i32
    %15 = vector.broadcast %c32_i32 : i32 to vector<1x128xi32>
    %16 = arith.cmpi slt, %14, %15 : vector<1x128xi32>
    %17 = vector.broadcast %7 : f32 to vector<1x128xf32>
    %18 = arith.subf %2, %17 : vector<1x128xf32>
    %cst_4 = arith.constant 0.000000e+00 : f32
    %19 = vector.broadcast %cst_4 : f32 to vector<1x128xf32>
    %20 = arith.select %16, %18, %19 : vector<1x128xi1>, vector<1x128xf32>
    %21 = arith.mulf %20, %20 : vector<1x128xf32>
    %22 = vector.shape_cast %21 : vector<1x128xf32> to vector<1x1x128xf32>
    %cst_5 = arith.constant dense<0.000000e+00> : vector<1xf32>
    %23 = vector.multi_reduction <add>, %22, %cst_5 [1, 2] : vector<1x1x128xf32> to vector<1xf32>
    %24 = vector.shape_cast %23 : vector<1xf32> to vector<1x1x1xf32>
    %25 = vector.extract %24[0, 0, 0] : f32 from vector<1x1x1xf32>
    %cst_6 = arith.constant 3.100000e+01 : f32
    %26 = arith.divf %25, %cst_6 : f32
    %27 = math.sqrt %26 : f32
    %cst_7 = arith.constant 9.99999974E-6 : f32
    %28 = arith.addf %27, %cst_7 : f32
    %cst_8 = arith.constant 1.000000e+00 : f32
    %29 = arith.divf %cst_8, %28 : f32
    %30 = vector.broadcast %29 : f32 to vector<1x128xf32>
    %31 = arith.mulf %20, %30 : vector<1x128xf32>
    %c0_9 = arith.constant 0 : index
    %c0_10 = arith.constant 0 : index
    %32 = vector.load %arg7[%c0_9, %c0_10] : memref<1x128xf32, #tpu.memory_space<vmem>>, vector<1x128xf32>
    tpu.vector_store %arg7[%c0_9, %c0_10], %31 {strides = array<i32>} : memref<1x128xf32, #tpu.memory_space<vmem>>, vector<1x128xf32>,
    %c0_11 = arith.constant 0 : index
    %c0_12 = arith.constant 0 : index
    %33 = vector.load %arg4[%c0_11, %c0_12] : memref<1x128xf32, #tpu.memory_space<vmem>>, vector<1x128xf32>
    %c0_13 = arith.constant 0 : index
    %c0_14 = arith.constant 0 : index
    %34 = vector.load %arg5[%c0_13, %c0_14] : memref<1x128xf32, #tpu.memory_space<vmem>>, vector<1x128xf32>
    %35 = arith.subf %33, %34 : vector<1x128xf32>
    %36 = math.exp %35 : vector<1x128xf32>
    %37 = arith.mulf %36, %31 : vector<1x128xf32>
    %cst_15 = arith.constant 8.000000e-01 : f32
    %cst_16 = arith.constant 1.200000e+00 : f32
    %38 = vector.broadcast %cst_15 : f32 to vector<1x128xf32>
    %39 = arith.maximumf %38, %36 : vector<1x128xf32>
    %40 = vector.broadcast %cst_16 : f32 to vector<1x128xf32>
    %41 = arith.minimumf %40, %39 : vector<1x128xf32>
    %42 = arith.mulf %41, %31 : vector<1x128xf32>
    %43 = arith.minimumf %37, %42 : vector<1x128xf32>
    %44 = vector.shape_cast %43 : vector<1x128xf32> to vector<1x1x128xf32>
    %cst_17 = arith.constant dense<0.000000e+00> : vector<1xf32>
    %45 = vector.multi_reduction <add>, %44, %cst_17 [1, 2] : vector<1x1x128xf32> to vector<1xf32>
    %46 = vector.shape_cast %45 : vector<1xf32> to vector<1x1x1xf32>
    %47 = vector.extract %46[0, 0, 0] : f32 from vector<1x1x1xf32>
    %cst_18 = arith.constant 3.125000e-02 : f32
    %48 = arith.mulf %47, %cst_18 : f32
    %cst_19 = arith.constant 0.000000e+00 : f32
    %49 = arith.subf %cst_19, %48 : f32
    %c0_20 = arith.constant 0 : index
    %c0_21 = arith.constant 0 : index
    %50 = vector.load %arg3[%c0_20, %c0_21] : memref<1x128xf32, #tpu.memory_space<vmem>>, vector<1x128xf32>
    %51 = arith.subf %50, %1 : vector<1x128xf32>
    %cst_22 = arith.constant -2.000000e-01 : f32
    %cst_23 = arith.constant 2.000000e-01 : f32
    %52 = vector.broadcast %cst_22 : f32 to vector<1x128xf32>
    %53 = arith.maximumf %52, %51 : vector<1x128xf32>
    %54 = vector.broadcast %cst_23 : f32 to vector<1x128xf32>
    %55 = arith.minimumf %54, %53 : vector<1x128xf32>
    %56 = arith.addf %1, %55 : vector<1x128xf32>
    %57 = arith.subf %50, %0 : vector<1x128xf32>
    %58 = arith.subf %56, %0 : vector<1x128xf32>
    %59 = arith.mulf %57, %57 : vector<1x128xf32>
    %60 = arith.mulf %58, %58 : vector<1x128xf32>
    %61 = arith.maximumf %59, %60 : vector<1x128xf32>
    %62 = vector.shape_cast %61 : vector<1x128xf32> to vector<1x1x128xf32>
    %cst_24 = arith.constant dense<0.000000e+00> : vector<1xf32>
    %63 = vector.multi_reduction <add>, %62, %cst_24 [1, 2] : vector<1x1x128xf32> to vector<1xf32>
    %64 = vector.shape_cast %63 : vector<1xf32> to vector<1x1x1xf32>
    %65 = vector.extract %64[0, 0, 0] : f32 from vector<1x1x1xf32>
    %cst_25 = arith.constant 3.125000e-02 : f32
    %66 = arith.mulf %65, %cst_25 : f32
    %cst_26 = arith.constant 5.000000e-01 : f32
    %67 = arith.mulf %cst_26, %66 : f32
    %c0_27 = arith.constant 0 : index
    %c0_28 = arith.constant 0 : index
    %68 = vector.load %arg6[%c0_27, %c0_28] : memref<1x128xf32, #tpu.memory_space<vmem>>, vector<1x128xf32>
    %69 = vector.shape_cast %68 : vector<1x128xf32> to vector<1x1x128xf32>
    %cst_29 = arith.constant dense<0.000000e+00> : vector<1xf32>
    %70 = vector.multi_reduction <add>, %69, %cst_29 [1, 2] : vector<1x1x128xf32> to vector<1xf32>
    %71 = vector.shape_cast %70 : vector<1xf32> to vector<1x1x1xf32>
    %72 = vector.extract %71[0, 0, 0] : f32 from vector<1x1x1xf32>
    %cst_30 = arith.constant 3.125000e-02 : f32
    %73 = arith.mulf %72, %cst_30 : f32
    %cst_31 = arith.constant 5.000000e-01 : f32
    %74 = arith.mulf %67, %cst_31 : f32
    %75 = arith.addf %74, %49 : f32
    %cst_32 = arith.constant 0.00999999977 : f32
    %76 = arith.mulf %73, %cst_32 : f32
    %77 = arith.subf %75, %76 : f32
    %78 = tpu.iota {dimensions = array<i32: 1>} : vector<1x128xi32>
    %c0_i32_33 = arith.constant 0 : i32
    %79 = vector.broadcast %c0_i32_33 : i32 to vector<1x128xi32>
    %80 = arith.cmpi eq, %78, %79 : vector<1x128xi32>
    %cst_34 = arith.constant 0.000000e+00 : f32
    %81 = vector.broadcast %67 : f32 to vector<1x128xf32>
    %82 = vector.broadcast %cst_34 : f32 to vector<1x128xf32>
    %83 = arith.select %80, %81, %82 : vector<1x128xi1>, vector<1x128xf32>
    %c1_i32 = arith.constant 1 : i32
    %84 = vector.broadcast %c1_i32 : i32 to vector<1x128xi32>
    %85 = arith.cmpi eq, %78, %84 : vector<1x128xi32>
    %cst_35 = arith.constant 0.000000e+00 : f32
    %86 = vector.broadcast %49 : f32 to vector<1x128xf32>
    %87 = vector.broadcast %cst_35 : f32 to vector<1x128xf32>
    %88 = arith.select %85, %86, %87 : vector<1x128xi1>, vector<1x128xf32>
    %89 = arith.addf %83, %88 : vector<1x128xf32>
    %c2_i32 = arith.constant 2 : i32
    %90 = vector.broadcast %c2_i32 : i32 to vector<1x128xi32>
    %91 = arith.cmpi eq, %78, %90 : vector<1x128xi32>
    %cst_36 = arith.constant 0.000000e+00 : f32
    %92 = vector.broadcast %73 : f32 to vector<1x128xf32>
    %93 = vector.broadcast %cst_36 : f32 to vector<1x128xf32>
    %94 = arith.select %91, %92, %93 : vector<1x128xi1>, vector<1x128xf32>
    %95 = arith.addf %89, %94 : vector<1x128xf32>
    %c3_i32 = arith.constant 3 : i32
    %96 = vector.broadcast %c3_i32 : i32 to vector<1x128xi32>
    %97 = arith.cmpi eq, %78, %96 : vector<1x128xi32>
    %cst_37 = arith.constant 0.000000e+00 : f32
    %98 = vector.broadcast %77 : f32 to vector<1x128xf32>
    %99 = vector.broadcast %cst_37 : f32 to vector<1x128xf32>
    %100 = arith.select %97, %98, %99 : vector<1x128xi1>, vector<1x128xf32>
    %101 = arith.addf %95, %100 : vector<1x128xf32>
    %c0_38 = arith.constant 0 : index
    %c0_39 = arith.constant 0 : index
    %102 = vector.load %arg8[%c0_38, %c0_39] : memref<1x128xf32, #tpu.memory_space<vmem>>, vector<1x128xf32>
    tpu.vector_store %arg8[%c0_38, %c0_39], %101 {strides = array<i32>} : memref<1x128xf32, #tpu.memory_space<vmem>>, vector<1x128xf32>,
    return
  }
  func.func @transform_0(%arg0: i32) -> (i32, i32) {
    %c0_i32 = arith.constant 0 : i32
    %c0_i32_0 = arith.constant 0 : i32
    %c0_i32_1 = arith.constant 0 : i32
    return %c0_i32, %c0_i32_0 : i32, i32
  }
  func.func @transform_1(%arg0: i32) -> (i32, i32) {
    %c0_i32 = arith.constant 0 : i32
    %c0_i32_0 = arith.constant 0 : i32
    %c0_i32_1 = arith.constant 0 : i32
    return %c0_i32, %c0_i32_0 : i32, i32
  }
  func.func @transform_2(%arg0: i32) -> (i32, i32) {
    %c0_i32 = arith.constant 0 : i32
    %c0_i32_0 = arith.constant 0 : i32
    %c0_i32_1 = arith.constant 0 : i32
    return %c0_i32, %c0_i32_0 : i32, i32
  }
  func.func @transform_3(%arg0: i32) -> (i32, i32) {
    %c0_i32 = arith.constant 0 : i32
    %c0_i32_0 = arith.constant 0 : i32
    %c0_i32_1 = arith.constant 0 : i32
    return %c0_i32, %c0_i32_0 : i32, i32
  }
  func.func @transform_4(%arg0: i32) -> (i32, i32) {
    %c0_i32 = arith.constant 0 : i32
    %c0_i32_0 = arith.constant 0 : i32
    %c0_i32_1 = arith.constant 0 : i32
    return %c0_i32, %c0_i32_0 : i32, i32
  }
  func.func @transform_5(%arg0: i32) -> (i32, i32) {
    %c0_i32 = arith.constant 0 : i32
    %c0_i32_0 = arith.constant 0 : i32
    %c0_i32_1 = arith.constant 0 : i32
    return %c0_i32, %c0_i32_0 : i32, i32
  }
  func.func @transform_6(%arg0: i32) -> (i32, i32) {
    %c0_i32 = arith.constant 0 : i32
    %c0_i32_0 = arith.constant 0 : i32
    %c0_i32_1 = arith.constant 0 : i32
    return %c0_i32, %c0_i32_0 : i32, i32
  }
  func.func @transform_7(%arg0: i32) -> (i32, i32) {
    %c0_i32 = arith.constant 0 : i32
    %c0_i32_0 = arith.constant 0 : i32
    %c0_i32_1 = arith.constant 0 : i32
    return %c0_i32, %c0_i32_0 : i32, i32
  }
}

</mosaic_0001>

<bundles_post_ra>
// kernel: ppo_update.2
= control target key start
LH: loop header
LB: loop body
LE: loop exit
PB: predicated region body
PF: predicated region fallthrough
CT: control target
= control target key end

     0   :  { %s344_s0 = inlined_call_operand.vmem [shape: f32[32], index: 0, kind: input, shape index: {}]   ;;  %s345_s1 = inlined_call_operand.<no memory space> [shape: f32[], index: 1, kind: input, shape index: {}]   ;;  %s346_s2 = inlined_call_operand.vmem [shape: f32[32], index: 2, kind: input, shape index: {}]   ;;  %s347_s3 = inlined_call_operand.vmem [shape: f32[32], index: 3, kind: input, shape index: {}]   ;;  %s348_s4 = inlined_call_operand.vmem [shape: f32[32], index: 4, kind: input, shape index: {}]   ;;  %s349_s5 = inlined_call_operand.vmem [shape: f32[32], index: 5, kind: input, shape index: {}]   ;;  %s350_s6 = inlined_call_operand.vmem [shape: f32[32], index: 6, kind: input, shape index: {}]   ;;  %s351_s7 = inlined_call_operand.vmem [shape: f32[1,128], index: 7, kind: output, shape index: {0}]   ;;  %s352_s8 = inlined_call_operand.vmem [shape: f32[1,128], index: 8, kind: output, shape index: {1}]  }
   0x1   :  { %v14_v0 = vstv %s345_s1 }
   0x2   :  { %v32_v1 = vld [vmem:[%s350_s6] sm:$0x1]  ;;  %v33_v2 = vlaneseq  ;;  %vm77_vm1 = vcmask 1040384  }
   0x3   :  { %v39_v3 = vld [vmem:[%s349_s5] sm:$0x1] }
   0x4   :  { %vm288_vm0 = vcmp.lt.s32.totalorder %v33_v2, 32  ;;  %v90_v18 = vshrl.u32 %v33_v2, 7  ;;  %v303_v19 = vand.u32 127, %v33_v2  ;;  %v53_v34 = vld [vmem:[%s347_s3] sm:$0x1] }
   0x5   :  { %v36_v5 = vsel %vm288_vm0, %v32_v1, %v14_v0  ;;  %v43_v6 = vsel %vm288_vm0, %v39_v3, %v14_v0  ;;  %v60_v35 = vld [vmem:[%s346_s2] sm:$0x1]  ;;  %v57_v36 = vsel %vm288_vm0, %v53_v34, %v14_v0 }
   0x6   :  { %38 = vst [vmem:[#allocation32] sm:$0x1] %v36_v5  ;;  %45 = vst [vmem:[#allocation33] sm:$0x1] %v43_v6  ;;  %v93_v20 = vmul.u32 128, %v90_v18  ;;  %v64_v37 = vsel %vm288_vm0, %v60_v35, %v14_v0  ;;  %vm192_vm5 = vcmp.eq.s32.totalorder %v303_v19, 1 }
   0x7   :  { %59 = vst [vmem:[#allocation35] sm:$0x1] %v57_v36  ;;  %66 = vst [vmem:[#allocation36] sm:$0x1] %v64_v37  ;;  %v46_v38 = vld [vmem:[%s348_s4] sm:$0x1] }
   0x8   :  { %v94_v21 = vadd.s32 %v93_v20, %v303_v19  ;;  %v50_v39 = vsel %vm288_vm0, %v46_v38, %v14_v0  ;;  %v67_v41 = vld [vmem:[%s344_s0] sm:$0x1]  ;;  %vm189_vm6 = vcmp.eq.s32.totalorder %v303_v19, 0  ;;  %vm196_vm7 = vcmp.eq.s32.totalorder %v303_v19, 2 }
   0x9   :  { %52 = vst [vmem:[#allocation34] sm:$0x1] %v50_v39  ;;  %v71_v42 = vsel %vm288_vm0, %v67_v41, %v14_v0  ;;  %vm200_vm8 = vcmp.eq.s32.totalorder %v303_v19, 3 }
   0xa   :  { %vm95_vm2 = vcmp.lt.s32.totalorder %v94_v21, 32  ;;  %73 = vst [vmem:[#allocation37] sm:$0x1] %v71_v42 }
   0xd   :  { %v296_v7 = vld [vmem:[#allocation32] sm:$0x1]  ;;  %v298_v8 = vld [vmem:[#allocation33] sm:$0x1] }
   0xe   :  { %v76_v9 = vsub.f32 %v296_v7, %v298_v8  ;;  %v129_v52 = vld [vmem:[#allocation35] sm:$0x1]  ;;  %v130_v53 = vld [vmem:[#allocation36] sm:$0x1] }
   0xf   :  { %v131_v54 = vsub.f32 %v129_v52, %v130_v53 }
  0x10   :  { %v78_v10 = vsel %vm77_vm1, %v76_v9, 0.0  ;;  %v151_v56 = vld [vmem:[#allocation34] sm:$0x1] }
  0x11   :  { %79 = vadd.xlane.f32.xlu0 %v78_v10  ;;  %v173_v43 = vld [vmem:[#allocation37] sm:$0x1]  ;;  %v132_v55 = vmul.f32 1.442695, %v131_v54  ;;  %v152_v57 = vsub.f32 %v151_v56, %v298_v8  ;;  %v156_v62 = vsub.f32 %v151_v56, %v296_v7 }
  0x12   :  { %v174_v45 = vsel %vm77_vm1, %v173_v43, 0.0 }
  0x13   :  { %v213_v58 = vclamps-f32 %v152_v57, 0.2  ;;  %v158_v3 = vmul.f32 %v156_v62, %v156_v62 }
  0x15   :  { %v155_v60 = vadd.f32 %v213_v58, %v298_v8 }
  0x17   :  { %v157_v63 = vsub.f32 %v155_v60, %v296_v7 }
  0x19   :  { %v159_v4 = vmul.f32 %v157_v63, %v157_v63 }
  0x1b   :  { %v160_v10 = vmax.f32 %v158_v3, %v159_v4 }
  0x9e   :  { %v80_v11 = vpop.xlane.xlu0 %79 }
  0x9f   :  { %v81_v12 = vrot.slane %v80_v11, 4 }
  0xa1   :  { %v82_v13 = vadd.f32 %v81_v12, %v80_v11  ;;  %v161_v11 = vsel %vm77_vm1, %v160_v10, 0.0 }
  0xa3   :  { %v83_v14 = vrot.slane %v82_v13, 2 }
  0xa5   :  { %v84_v15 = vadd.f32 %v83_v14, %v82_v13 }
  0xa7   :  { %v85_v16 = vrot.slane %v84_v15, 1 }
  0xa9   :  { %v86_v17 = vadd.f32 %v85_v16, %v84_v15 }
  0xab   :  { %214 = vpush %v86_v17 }
  0xdc   :  { %s215_s1 = spop %214 }
  0xdd   :  { %s88_s5 = smul.f32 0.03125, %s215_s1 }
  0xdf   :  { %v96_v22 = vstv %s88_s5 }
  0xe0   :  { %v97_v23 = vsub.f32 %v76_v9, %v96_v22 }
  0xe2   :  { %v98_v24 = vsel %vm95_vm2, %v97_v23, 0.0 }
  0xe3   :  { %v99_v25 = vmul.f32 %v98_v24, %v98_v24 }
  0xe5   :  { %v100_v26 = vsel %vm77_vm1, %v99_v25, 0.0 }
  0xe6   :  { %101 = vadd.xlane.f32.xlu0 %v100_v26 }
  0xea   :  { %175 = vadd.xlane.f32.xlu0 %v174_v45 }
 0x173   :  { %v102_v27 = vpop.xlane.xlu0 %101 }
 0x174   :  { %v103_v28 = vrot.slane %v102_v27, 4 }
 0x176   :  { %v104_v29 = vadd.f32 %v103_v28, %v102_v27 }
 0x177   :  { %v176_v7 = vpop.xlane.xlu0 %175 }
 0x178   :  { %v105_v30 = vrot.slane %v104_v29, 2  ;;  %v177_v12 = vrot.slane %v176_v7, 4 }
 0x17a   :  { %v106_v31 = vadd.f32 %v105_v30, %v104_v29  ;;  %v178_v14 = vadd.f32 %v177_v12, %v176_v7 }
 0x17c   :  { %v107_v32 = vrot.slane %v106_v31, 1  ;;  %v179_v17 = vrot.slane %v178_v14, 2 }
 0x17e   :  { %v108_v33 = vadd.f32 %v107_v32, %v106_v31 }
 0x180   :  { %216 = vpush %v108_v33 }
 0x1b1   :  { %s217_s3 = spop %216 }
 0x1b2   :  { %s112_s16 = smul.f32 0.032258064, %s217_s3 }
 0x1b4   :  { %v113_v40 = vstv %s112_s16 }
 0x1b5   :  { %228 = vrsqrt.f32 %v113_v40  ;;  %vm116_vm3 = vcmp.eq.f32.partialorder %v113_v40, inf  ;;  %v119_v47 = vand.u32 2147483648, %v113_v40  ;;  %vm118_vm4 = vcmp.eq.f32.partialorder %v113_v40, 0.0 }
 0x1bf   :  { %v229_v44 = vpop.eup %228 }
 0x1c0   :  { %v115_v46 = vmul.f32 %v229_v44, %v113_v40 }
 0x1c2   :  { %v117_v48 = vsel %vm116_vm3, %v113_v40, %v115_v46 }
 0x1c3   :  { %v120_v49 = vsel %vm118_vm4, %v119_v47, %v117_v48 }
 0x1c4   :  { %218 = vpush %v120_v49 }
 0x1f5   :  { %s219_s4 = spop %218 }
 0x1f6   :  { %s122_s18 = sadd.f32 1e-05, %s219_s4 }
 0x1f8   :  { %v123_v50 = vstv %s122_s18 }
 0x1f9   :  { %230 = vrcp.f32 %v123_v50 }
 0x1fa   :  { %232 = vpow2.f32 %v132_v55 }
 0x203   :  { %v231_v51 = vpop.eup %230 }
 0x204   :  { %220 = vpush %v231_v51  ;;  %v233_v59 = vpop.eup %232 }
 0x205   :  { %v135_v61 = vmax.f32 %v233_v59, 0.8 }
 0x207   :  { %v136_v0 = vmin.f32 %v135_v61, 1.2 }
 0x235   :  { %s221_s0 = spop %220 }
 0x236   :  { %v126_v1 = vstv %s221_s0 }
 0x237   :  { %v127_v2 = vmul.f32 %v126_v1, %v98_v24  ;;  %v180_v24 = vadd.f32 %v179_v17, %v178_v14 }
 0x239   :  { %128 = vst [vmem:[%s351_s7] sm:$0x1] %v127_v2  ;;  %v134_v5 = vmul.f32 %v233_v59, %v127_v2  ;;  %v137_v6 = vmul.f32 %v136_v0, %v127_v2  ;;  %v181_v29 = vrot.slane %v180_v24, 1 }
 0x23b   :  { %v138_v9 = vmin.f32 %v134_v5, %v137_v6  ;;  %v182_v32 = vadd.f32 %v181_v29, %v180_v24 }
 0x23d   :  { %v139_v8 = vsel %vm77_vm1, %v138_v9, 0.0 }
 0x23e   :  { %140 = vadd.xlane.f32.xlu1 %v139_v8 }
 0x242   :  { %162 = vadd.xlane.f32.xlu1 %v161_v11 }
 0x2cb   :  { %v141_v13 = vpop.xlane.xlu1 %140 }
 0x2cc   :  { %v142_v15 = vrot.slane %v141_v13, 4 }
 0x2ce   :  { %v143_v16 = vadd.f32 %v142_v15, %v141_v13 }
 0x2cf   :  { %v163_v18 = vpop.xlane.xlu1 %162 }
 0x2d0   :  { %v144_v20 = vrot.slane %v143_v16, 2  ;;  %v164_v21 = vrot.slane %v163_v18, 4 }
 0x2d2   :  { %v165_v22 = vadd.f32 %v164_v21, %v163_v18  ;;  %v145_v23 = vadd.f32 %v144_v20, %v143_v16 }
 0x2d4   :  { %v166_v25 = vrot.slane %v165_v22, 2  ;;  %v146_v26 = vrot.slane %v145_v23, 1 }
 0x2d6   :  { %v167_v27 = vadd.f32 %v166_v25, %v165_v22  ;;  %v147_v28 = vadd.f32 %v146_v26, %v145_v23 }
 0x2d8   :  { %222 = vpush %v147_v28  ;;  %v168_v30 = vrot.slane %v167_v27, 1 }
 0x2da   :  { %v169_v31 = vadd.f32 %v168_v30, %v167_v27 }
 0x2dc   :  { %224 = vpush %v169_v31 }
 0x2dd   :  { %226 = vpush %v182_v32 }
 0x309   :  { %s223_s7 = spop %222 }
 0x30a   :  { %s149_s21 = smul.f32 0.03125, %s223_s7 }
 0x30c   :  { %s150_s22 = ssub.f32 0.0, %s149_s21 }
 0x30d   :  { %s225_s23 = spop %224 }
 0x30e   :  { %s171_s24 = smul.f32 0.03125, %s225_s23  ;;  %s227_s25 = spop %226  ;;  %v193_v33 = vstv %s150_s22 }
 0x30f   :  { %s184_s26 = smul.f32 0.03125, %s227_s25  ;;  %v194_v35 = vsel %vm192_vm5, %v193_v33, 0.0 }
 0x310   :  { %s172_s27 = smul.f32 0.5, %s171_s24 }
 0x311   :  { %s187_s30 = smul.f32 0.01, %s184_s26  ;;  %v197_v38 = vstv %s184_s26 }
 0x312   :  { %s185_s28 = smul.f32 0.5, %s172_s27  ;;  %v190_v34 = vstv %s172_s27  ;;  %v198_v39 = vsel %vm196_vm7, %v197_v38, 0.0 }
 0x313   :  { %v191_v36 = vsel %vm189_vm6, %v190_v34, 0.0 }
 0x314   :  { %s186_s29 = sadd.f32 %s185_s28, %s150_s22  ;;  %v195_v37 = vadd.f32 %v194_v35, %v191_v36 }
 0x316   :  { %s188_s9 = ssub.f32 %s186_s29, %s187_s30  ;;  %v199_v40 = vadd.f32 %v198_v39, %v195_v37 }
 0x318   :  { %v201_v41 = vstv %s188_s9 }
 0x319   :  { %v202_v42 = vsel %vm200_vm8, %v201_v41, 0.0 }
 0x31a   :  { %v203_v43 = vadd.f32 %v202_v42, %v199_v40 }
 0x31c   :  { %204 = vst [vmem:[%s352_s8] sm:$0x1] %v203_v43 }

</bundles_post_ra>
